<compile_context>
chip_gen: v5e
topology: v5e:2x2
jax: 0.10.0
libtpu: 0.0.40
codegen_flags: <defaults>
</compile_context>

<pallas_src>
import functools

import jax
import jax.numpy as jnp
from jax import lax
from jax.experimental import pallas as pl
from jax.experimental.pallas import tpu as pltpu

_MATMUL_DTYPE = jnp.bfloat16   # MXU operand dtype; accumulation stays f32.
_XLA_FALLBACK_ROWS = 128       # M <= this => single tiny tile; let XLA fuse it.


def _round_up(x, m):
    return ((x + m - 1) // m) * m


@functools.lru_cache(maxsize=1)
def _vmem_capacity_bytes():
    """Per-core VMEM capacity (generation aware); conservative default = v7x."""
    try:
        return int(pltpu.get_tpu_info().vmem_capacity_bytes)
    except Exception:
        return 64 * 1024 * 1024


def _resident_spec(block_shape):
    """BlockSpec for a grid-invariant operand: single-buffered if supported."""
    index_map = lambda i: (0,) * len(block_shape)
    if hasattr(pl, "Buffered"):
        try:
            return pl.BlockSpec(block_shape, index_map,
                                pipeline_mode=pl.Buffered(1))
        except TypeError:   # older jax without the pipeline_mode kwarg
            pass
    return pl.BlockSpec(block_shape, index_map)


def _norm_lrelu_epilogue(acc, alpha, beta):
    # F.normalize(x, dim=1): x / max(||x||_2, 1e-12)
    #   == x * rsqrt(max(||x||^2, 1e-24))   (single EUP rsqrt + multiply)
    ssq = jnp.sum(acc * acc, axis=-1, keepdims=True)
    y = acc * lax.rsqrt(jnp.maximum(ssq, 1e-24))
    y = y * alpha + beta
    # LeakyReLU(0.2): max(y, 0.2*y) is identical for slope < 1 (one VALU op).
    return jnp.maximum(y, 0.2 * y)


def _conv_norm_lrelu_kernel(ab_ref, p_ref, w_ref, b_ref, o_ref):
    # ab_ref: SMEM (2,) f32 = (alpha, beta)
    # p_ref : VMEM (TM, K)  bf16 im2col patch tile (double-buffered over grid)
    # w_ref : VMEM (K, Cp)  bf16 reordered weight  (resident, single-buffered)
    # b_ref : VMEM (1, Cp)  f32 bias row           (resident, single-buffered)
    acc = jnp.dot(p_ref[...], w_ref[...], preferred_element_type=jnp.float32)
    acc = acc + b_ref[...]
    o_ref[...] = _norm_lrelu_epilogue(acc, ab_ref[0], ab_ref[1])


def _extract_patches_nhwc(x, k=3, stride=2, pad=1):
    """x: [N, H, W, C] NHWC -> patches [N*Ho*Wo, k*k*C] in (kh, kw, c) order.

    Reshape-only from NHWC (no transpose of the big activation tensor).
    """
    N, H, W, C = x.shape
    Ho = (H + 2 * pad - k) // stride + 1
    Wo = (W + 2 * pad - k) // stride + 1
    xp = jnp.pad(x, ((0, 0), (pad, pad), (pad, pad), (0, 0)))
    cols = []
    for kh in range(k):
        for kw in range(k):
            cols.append(
                xp[:,
                   kh:kh + (Ho - 1) * stride + 1:stride,
                   kw:kw + (Wo - 1) * stride + 1:stride, :])
    p = jnp.stack(cols, axis=3)                  # [N, Ho, Wo, k*k, C]
    p = p.reshape(N * Ho * Wo, k * k * C)        # contiguous, no transpose
    return p, Ho, Wo


def conv_norm_lrelu_nhwc(x, weight, bias, alpha, beta):
    """One Encoder block in NHWC: Conv2d(3,s=2,p=1) -> Normalization -> LeakyReLU.

    x: [N, H, W, C_in] f32.  weight: [C_out, C_in, 3, 3] (PyTorch layout).
    Returns [N, Ho, Wo, C_out] f32.
    """
    N, H, W, C_in = x.shape
    C_out = weight.shape[0]

    patches, Ho, Wo = _extract_patches_nhwc(x)
    M, K = patches.shape

    # weight [C_out, C_in, kh, kw] -> [kh, kw, C_in, C_out] -> [K, C_out]
    # (the tiny weight absorbs the layout permutation, not the activation).
    w2 = jnp.transpose(weight, (2, 3, 1, 0)).reshape(K, C_out)

    if M <= _XLA_FALLBACK_ROWS:
        # Tiny layer => a single grid step where pallas_call launch/pipeline
        # overhead dominates; let XLA fuse the identical math instead.
        acc = jnp.dot(patches.astype(_MATMUL_DTYPE), w2.astype(_MATMUL_DTYPE),
                      preferred_element_type=jnp.float32)
        acc = acc + bias.astype(jnp.float32)[None, :]
        y = _norm_lrelu_epilogue(acc, alpha, beta)
        return y.reshape(N, Ho, Wo, C_out)

    Cp = _round_up(C_out, 128)                   # lane-dense output channels
    itemsize = jnp.dtype(_MATMUL_DTYPE).itemsize
    vmem_cap = _vmem_capacity_bytes()

    def _footprint(tm):
        return (2 * tm * K * itemsize            # double-buffered patch tiles
                + K * Cp * itemsize              # resident weight (1 buffer)
                + 2 * tm * Cp * 4                # double-buffered f32 output
                + 2 * tm * Cp * 4                # f32 acc + epilogue temporaries
                + Cp * 4                         # resident bias
                + (1 << 20))                     # compiler / spill slack

    # Row-tile selection: 128-aligned; allowed to grow on 128 MiB parts
    # (v5e/v6e), capped at 512 on 64 MiB parts (v7x); shrunk while the
    # footprint exceeds ~50% of per-core VMEM; then split so that >=2 tiles
    # exist whenever M > 128 (keeps both v7x TensorCores busy).
    tm_cap = 2048 if vmem_cap >= (100 << 20) else 512
    vmem_budget = max(int(0.5 * vmem_cap), 24 << 20)
    TM = min(tm_cap, _round_up(M, 128))
    while TM > 128 and _footprint(TM) > vmem_budget:
        TM = _round_up(TM // 2, 128)
    if TM > 128 and _round_up(M, TM) // TM < 2:
        TM = _round_up(TM // 2, 128)
    Mp = _round_up(M, TM)

    # Zero-padded rows / channels are inert: padded weight columns & bias are
    # 0, contribute 0 to both the matmul and the channel-norm reduction, and
    # padded rows / channels are sliced off below.  K is left unpadded in HBM
    # (it equals the full array dim, so the BlockSpec is legal; fattening it
    # to 128 lanes would multiply mem-bound patch traffic).
    patches = jnp.pad(patches, ((0, Mp - M), (0, 0))).astype(_MATMUL_DTYPE)
    w2 = jnp.pad(w2, ((0, 0), (0, Cp - C_out))).astype(_MATMUL_DTYPE)
    b2 = jnp.pad(bias.reshape(1, C_out).astype(jnp.float32),
                 ((0, 0), (0, Cp - C_out)))
    ab = jnp.array([alpha, beta], dtype=jnp.float32)

    vmem_limit = int(min(max(_footprint(TM) * 5 // 4, 32 << 20),
                         int(0.65 * vmem_cap)))

    out = pl.pallas_call(
        _conv_norm_lrelu_kernel,
        out_shape=jax.ShapeDtypeStruct((Mp, Cp), jnp.float32),
        grid=(Mp // TM,),
        in_specs=[
            pl.BlockSpec(memory_space=pltpu.MemorySpace.SMEM),  # alpha/beta
            pl.BlockSpec((TM, K), lambda i: (i, 0)),            # patch tile
            _resident_spec((K, Cp)),                            # weight
            _resident_spec((1, Cp)),                            # bias
        ],
        out_specs=pl.BlockSpec((TM, Cp), lambda i: (i, 0)),
        compiler_params=pltpu.CompilerParams(
            dimension_semantics=("parallel",),
            vmem_limit_bytes=vmem_limit),
    )(ab, patches, w2, b2)

    return out[:M, :C_out].reshape(N, Ho, Wo, C_out)


def init_encoder_params(key):
    # Conv weights: normal(0, 0.02) per the module's init loop.
    # Conv biases: PyTorch default Conv2d init (uniform(+-1/sqrt(fan_in))).
    # Normalization: alpha=1, beta=0.
    chans = [(3, 64), (64, 128), (128, 256), (256, 512), (512, 512)]
    params = []
    for cin, cout in chans:
        key, kw, kb = jax.random.split(key, 3)
        w = 0.02 * jax.random.normal(kw, (cout, cin, 3, 3), jnp.float32)
        bound = 1.0 / float((cin * 9) ** 0.5)
        b = jax.random.uniform(kb, (cout,), jnp.float32, -bound, bound)
        params.append({"w": w, "b": b, "alpha": 1.0, "beta": 0.0})
    return params


def encoder_forward(x, params, return_skip=True):
    """x: NCHW input (PyTorch convention). Returns NCHW outputs like the module."""
    h = jnp.transpose(x, (0, 2, 3, 1))            # NCHW -> NHWC once
    skip = []
    for i, p in enumerate(params):
        h = conv_norm_lrelu_nhwc(h, p["w"], p["b"], p["alpha"], p["beta"])
        if i < len(params) - 1:
            skip.append(h)
    out = jnp.transpose(h, (0, 3, 1, 2))          # back to NCHW at the boundary
    skip = [jnp.transpose(s, (0, 3, 1, 2)) for s in skip]
    if return_skip:
        return out, skip
    return out


if __name__ == "__main__":
    key = jax.random.PRNGKey(0)
    key, kx = jax.random.split(key)
    # NCHW input, 3 channels for the first conv; 32x32 keeps layer 1 on the
    # multi-tile Pallas path (M = 2*16*16 = 512 rows) while staying small.
    x = jax.random.normal(kx, (2, 3, 32, 32), jnp.float32)
    params = init_encoder_params(key)

    fwd = jax.jit(encoder_forward, static_argnames=("return_skip",))
    out, skip = fwd(x, params, return_skip=True)
    out = jax.block_until_ready(out)
    skip = [jax.block_until_ready(s) for s in skip]

    # Shapes implied by the stride-2 convs: 32 -> 16 -> 8 -> 4 -> 2 -> 1.
    assert out.shape == (2, 512, 1, 1)
    assert [s.shape for s in skip] == [
        (2, 64, 16, 16), (2, 128, 8, 8), (2, 256, 4, 4), (2, 512, 2, 2)]
    assert all(bool(jnp.all(jnp.isfinite(a))) for a in [out] + skip)
    print("KERNEL_OK")
</pallas_src>

<mosaic_0001>
module attributes {stable_mosaic.version = 11 : i64} {
  func.func @_conv_norm_lrelu_kernel(%arg0: i32, %arg1: memref<2xf32, #tpu.memory_space<smem>>, %arg2: memref<256x27xbf16, #tpu.memory_space<vmem>>, %arg3: memref<27x128xbf16, #tpu.memory_space<vmem>>, %arg4: memref<1x128xf32, #tpu.memory_space<vmem>>, %arg5: memref<256x128xf32, #tpu.memory_space<vmem>>) attributes {dimension_semantics = [#tpu.dimension_semantics<parallel>], iteration_bounds = array<i64: 2>, scalar_prefetch = 0 : i64, scratch_operands = 0 : i64, tpu.core_type = #tpu.core_type<tc>, window_params = [{transform_indices = @transform_0, window_bounds = array<i64: 2>}, {transform_indices = @transform_1, window_bounds = array<i64: 256, 27>}, {pipeline_mode = #tpu.pipeline_mode<synchronous>, transform_indices = @transform_2, window_bounds = array<i64: 27, 128>}, {pipeline_mode = #tpu.pipeline_mode<synchronous>, transform_indices = @transform_3, window_bounds = array<i64: 1, 128>}, {transform_indices = @transform_4, window_bounds = array<i64: 256, 128>}]} {
    %c0 = arith.constant 0 : index
    %c0_0 = arith.constant 0 : index
    %0 = vector.load %arg2[%c0, %c0_0] : memref<256x27xbf16, #tpu.memory_space<vmem>>, vector<256x27xbf16>
    %c0_1 = arith.constant 0 : index
    %c0_2 = arith.constant 0 : index
    %1 = vector.load %arg3[%c0_1, %c0_2] : memref<27x128xbf16, #tpu.memory_space<vmem>>, vector<27x128xbf16>
    %cst = arith.constant dense<0.000000e+00> : vector<256x128xf32>
    %2 = tpu.matmul %0, %1, %cst {dimension_numbers = #tpu.dot_dimension_numbers<[1], [0], [0], [1], [0, 0, 1, 1], [], []>} : vector<256x27xbf16>, vector<27x128xbf16>, vector<256x128xf32> -> vector<256x128xf32>
    %c0_3 = arith.constant 0 : index
    %c0_4 = arith.constant 0 : index
    %3 = vector.load %arg4[%c0_3, %c0_4] : memref<1x128xf32, #tpu.memory_space<vmem>>, vector<1x128xf32>
    %4 = vector.broadcast %3 : vector<1x128xf32> to vector<256x128xf32>
    %5 = arith.addf %2, %4 : vector<256x128xf32>
    %c0_5 = arith.constant 0 : index
    %6 = memref.load %arg1[%c0_5] : memref<2xf32, #tpu.memory_space<smem>>
    %c1 = arith.constant 1 : index
    %7 = memref.load %arg1[%c1] : memref<2xf32, #tpu.memory_space<smem>>
    %8 = arith.mulf %5, %5 : vector<256x128xf32>
    %cst_6 = arith.constant dense<0.000000e+00> : vector<256xf32>
    %9 = vector.multi_reduction <add>, %8, %cst_6 [1] : vector<256x128xf32> to vector<256xf32>
    %10 = vector.shape_cast %9 : vector<256xf32> to vector<256x1xf32>
    %cst_7 = arith.constant 1.000000e-24 : f32
    %11 = vector.broadcast %cst_7 : f32 to vector<256x1xf32>
    %12 = arith.maximumf %10, %11 : vector<256x1xf32>
    %13 = math.rsqrt %12 : vector<256x1xf32>
    %14 = vector.broadcast %13 : vector<256x1xf32> to vector<256x128xf32>
    %15 = arith.mulf %5, %14 : vector<256x128xf32>
    %16 = vector.broadcast %6 : f32 to vector<256x128xf32>
    %17 = arith.mulf %15, %16 : vector<256x128xf32>
    %18 = vector.broadcast %7 : f32 to vector<256x128xf32>
    %19 = arith.addf %17, %18 : vector<256x128xf32>
    %cst_8 = arith.constant 2.000000e-01 : f32
    %20 = vector.broadcast %cst_8 : f32 to vector<256x128xf32>
    %21 = arith.mulf %20, %19 : vector<256x128xf32>
    %22 = arith.maximumf %19, %21 : vector<256x128xf32>
    %c0_9 = arith.constant 0 : index
    %c0_10 = arith.constant 0 : index
    %23 = vector.load %arg5[%c0_9, %c0_10] : memref<256x128xf32, #tpu.memory_space<vmem>>, vector<256x128xf32>
    tpu.vector_store %arg5[%c0_9, %c0_10], %22 {strides = array<i32>} : memref<256x128xf32, #tpu.memory_space<vmem>>, vector<256x128xf32>,
    return
  }
  func.func @transform_0(%arg0: i32) -> i32 {
    %c0_i32 = arith.constant 0 : i32
    %c0_i32_0 = arith.constant 0 : i32
    return %c0_i32 : i32
  }
  func.func @transform_1(%arg0: i32) -> (i32, i32) {
    %c0_i32 = arith.constant 0 : i32
    %c0_i32_0 = arith.constant 0 : i32
    return %arg0, %c0_i32 : i32, i32
  }
  func.func @transform_2(%arg0: i32) -> (i32, i32) {
    %c0_i32 = arith.constant 0 : i32
    %c0_i32_0 = arith.constant 0 : i32
    %c0_i32_1 = arith.constant 0 : i32
    return %c0_i32, %c0_i32_0 : i32, i32
  }
  func.func @transform_3(%arg0: i32) -> (i32, i32) {
    %c0_i32 = arith.constant 0 : i32
    %c0_i32_0 = arith.constant 0 : i32
    %c0_i32_1 = arith.constant 0 : i32
    return %c0_i32, %c0_i32_0 : i32, i32
  }
  func.func @transform_4(%arg0: i32) -> (i32, i32) {
    %c0_i32 = arith.constant 0 : i32
    %c0_i32_0 = arith.constant 0 : i32
    return %arg0, %c0_i32 : i32, i32
  }
}

</mosaic_0001>

<bundles_post_ra>
// kernel: encoder_forward.1
= control target key start
LH: loop header
LB: loop body
LE: loop exit
PB: predicated region body
PF: predicated region fallthrough
CT: control target
= control target key end

     0   :  { %9 = vsyncpa [#allocation3], 0  ;;  %s1469_s15 = smov 0   ;;  %s2268_s0 = inlined_call_operand.vmem [shape: f32[2], index: 0, kind: input, shape index: {}]   ;;  %s2269_s1 = inlined_call_operand.vmem [shape: bf16[512,27], index: 1, kind: input, shape index: {}]   ;;  %s2270_s2 = inlined_call_operand.vmem [shape: bf16[27,128], index: 2, kind: input, shape index: {}]   ;;  %s2271_s3 = inlined_call_operand.vmem [shape: f32[1,128], index: 3, kind: input, shape index: {}]   ;;  %s2272_s4 = inlined_call_operand.vmem [shape: f32[512,128], index: 4, kind: output, shape index: {}]  }
   0x1 LB: > { %s1204_s16 = sadd.s32 4294967295, %s1440_s15   ;;  %p1206_p0 = scmp.ge.s32.totalorder %s1440_s15, 1  ;;  %s1440_s15 = sphi %s1469_s15, %s15_s15  }
   0x2   : > { %p135_p1 = scmp.lt.s32.totalorder %s1440_s15, 3  ;;  %s147_s19 = sshll.u32 %s2268_s0, 4  ;;  %s148_s19 = int_to_ptr.vmem [resolvable:$true] %s147_s19 }
   0x3   : > { %p1338_p3 = scmp.eq.s32.totalorder %s1204_s16, 0  ;;  %s1442_s20 = smov [#allocation2]  }
   0x4   : > { %p136_p2 = pnand %p1206_p0, %p135_p1 }
   0x6   : > { %p1334_p4 = pneg %p136_p2  ;;  %175 = sbr.rel (%p136_p2) target bundleno = 418 (0x1a2), region = 36 }
   0x8   : > { %p1335_p5 = pnand %p1338_p3, %p1334_p4 }
   0xa   : > { %1337 = dma.vmem_to_smem (!%p1335_p5), %s148_s19, 16, %s1442_s20, [#allocation3]  }
   0xb   : > { %1435 = dma.done.wait (%p1338_p3), [#allocation3], 16  }
   0xc   : > { %1437 = vsyncadd (%p1338_p3), [#allocation3], 4294967280 }
   0xd   : > { %182 = sfence }
   0xe   : > { %v1285_v0 = vld [vmem:[%s2270_s2 + $0x8] sm:$0xf]  ;;  %v1323_v1 = vld [vmem:[%s2270_s2 + $0x8] sm:$0x30]  ;;  %vm396_vm0 = vcmask 1044480   ;;  %vm397_vm1 = vcmask 1045504  }
   0xf   : > { %v1286_v2 = vor.u32 %v1323_v1, %v1285_v0  ;;  %s1211_s25 = sshll.u32 %s1204_s16, 5  ;;  %v1443_v3 = vmov 65535   ;;  %v1322_v7 = vld [vmem:[%s2270_s2] sm:$0xff]  ;;  %vm347_vm2 = vcmask 220160   ;;  %s492_s8 = sld [smem:[#allocation2]] }
  0x10   : > { %v398_v4 = vsel %vm396_vm0, 4294967295, %v1443_v3  ;;  %p204_p6 = scmp.lt.s32.totalorder %s1211_s25, 63  ;;  %v1532_v24 = vld [vmem:[%s2271_s3] ss:$0 sm:$0xff]  ;;  %s1700_s9 = sld [smem:[#allocation2 + $0x1]] }
  0x11   : > { %v399_v5 = vsel %vm397_vm1, %v398_v4, 0 }
  0x12   : > { %v401_v6 = vand.u32 %v1286_v2, %v399_v5  ;;  %s2276_s25 = smov (!%p204_p6, %s1211_s25), 63 }
  0x13   : > { %s1212_s28 = sshll.u32 %s2276_s25, 2  ;;  %s1214_s10 = sshll.u32 %s2276_s25, 3 }
  0x14   : > { %409 = vmatpush.bf16.msra.mxu0 %v401_v6  ;;  %1324 = vmatpush.bf16.msra.mxu1 %v401_v6  ;;  %s1495_s5 = scalar_lea.vmem %s2269_s1, %s1212_s28  ;;  %s1762_s13 = scalar_lea.vmem %s2272_s4, %s1214_s10 }
  0x15   : > { %1325 = vmatpush.bf16.msra.mxu2 %v401_v6  ;;  %1326 = vmatpush.bf16.msra.mxu3 %v401_v6  ;;  %v1306_v8 = vld [vmem:[%s1495_s5] sm:$0xff]  ;;  %v1307_v12 = vld [vmem:[%s1495_s5 + $0x8] sm:$0xff]  ;;  %v1308_v16 = vld [vmem:[%s1495_s5 + $0x10] sm:$0xff] }
  0x16   : > { %v1310_v9 = vld [vmem:[%s1495_s5 + $0x20] sm:$0xff]  ;;  %v1311_v13 = vld [vmem:[%s1495_s5 + $0x28] sm:$0xff]  ;;  %v1312_v17 = vld [vmem:[%s1495_s5 + $0x30] sm:$0xff] }
  0x17   : > { %v1314_v10 = vld [vmem:[%s1495_s5 + $0x40] sm:$0xff]  ;;  %v1319_v14 = vld [vmem:[%s1495_s5 + $0x68] sm:$0xff]  ;;  %v1316_v18 = vld [vmem:[%s1495_s5 + $0x50] sm:$0xff] }
  0x18   : > { %410 = vmatpush.bf16.msra.mxu0 %v1322_v7  ;;  %1327 = vmatpush.bf16.msra.mxu1 %v1322_v7  ;;  %v1318_v11 = vld [vmem:[%s1495_s5 + $0x60] sm:$0xff]  ;;  %v1315_v15 = vld [vmem:[%s1495_s5 + $0x48] sm:$0xff]  ;;  %v1320_v19 = vld [vmem:[%s1495_s5 + $0x70] sm:$0xff] }
  0x19   : > { %1328 = vmatpush.bf16.msra.mxu2 %v1322_v7  ;;  %1329 = vmatpush.bf16.msra.mxu3 %v1322_v7  ;;  %v1309_v20 = vld [vmem:[%s1495_s5 + $0x18] sm:$0xff] }
  0x1a   : > { %v1313_v21 = vld [vmem:[%s1495_s5 + $0x38] sm:$0xff] }
  0x1b   : > { %1287 = vmatmul.msk.bf16.vlgmr.msra.gmra.mxu0 %vm347_vm2, %v1306_v8  ;;  %1291 = vmatmul.msk.bf16.vlgmr.msra.gmra.mxu1 %vm347_vm2, %v1310_v9  ;;  %v1317_v22 = vld [vmem:[%s1495_s5 + $0x58] sm:$0xff] }
  0x1c   : > { %1295 = vmatmul.msk.bf16.vlgmr.msra.gmra.mxu2 %vm347_vm2, %v1314_v10  ;;  %1299 = vmatmul.msk.bf16.vlgmr.msra.gmra.mxu3 %vm347_vm2, %v1318_v11  ;;  %v1321_v23 = vld [vmem:[%s1495_s5 + $0x78] sm:$0xff] }
  0x2b   : > { %1288 = vmatmul.msk.bf16.gmra.mxu0 %vm347_vm2, %v1307_v12  ;;  %1292 = vmatmul.msk.bf16.gmra.mxu1 %vm347_vm2, %v1311_v13 }
  0x2c   : > { %1300 = vmatmul.msk.bf16.gmra.mxu3 %vm347_vm2, %v1319_v14  ;;  %1296 = vmatmul.msk.bf16.gmra.mxu2 %vm347_vm2, %v1315_v15 }
  0x3b   : > { %1289 = vmatmul.msk.bf16.gmra.mxu0 %vm347_vm2, %v1308_v16  ;;  %1293 = vmatmul.msk.bf16.gmra.mxu1 %vm347_vm2, %v1312_v17 }
  0x3c   : > { %1297 = vmatmul.msk.bf16.gmra.mxu2 %vm347_vm2, %v1316_v18  ;;  %1301 = vmatmul.msk.bf16.gmra.mxu3 %vm347_vm2, %v1320_v19 }
  0x4b   : > { %1290 = vmatmul.msk.bf16.gmra.mxu0 %vm347_vm2, %v1309_v20  ;;  %1294 = vmatmul.msk.bf16.gmra.mxu1 %vm347_vm2, %v1313_v21 }
  0x4c   : > { %1298 = vmatmul.msk.bf16.gmra.mxu2 %vm347_vm2, %v1317_v22  ;;  %1302 = vmatmul.msk.bf16.gmra.mxu3 %vm347_vm2, %v1321_v23 }
  0x98   : > { %v412_v25 = vpop.f32.mrf.mxu0  ;;  %v432_v26 = vpop.f32.mrf.mxu1 }
  0x99   : > { %v1535_v27 = vadd.f32 %v1532_v24, %v412_v25  ;;  %v1538_v28 = vadd.f32 %v1532_v24, %v432_v26 }
  0x9b   : > { %v502_v29 = vmul.f32 %v1538_v28, %v1538_v28  ;;  %v494_v30 = vmul.f32 %v1535_v27, %v1535_v27 }
  0x9d   : > { %542 = vadd.xlane.f32.xlu2 %v502_v29  ;;  %526 = vadd.xlane.f32.xlu0 %v494_v30 }
  0x9f   : > { %v452_v31 = vpop.f32.mrf.mxu2  ;;  %v472_v32 = vpop.f32.mrf.mxu3 }
  0xa0   : > { %v1545_v33 = vadd.f32 %v1532_v24, %v452_v31  ;;  %v1548_v34 = vadd.f32 %v1532_v24, %v472_v32  ;;  %v414_v35 = vpop.f32.mrf.mxu0  ;;  %v434_v36 = vpop.f32.mrf.mxu1 }
  0xa1   : > { %v1555_v39 = vadd.f32 %v1532_v24, %v414_v35  ;;  %v1573_v50 = vadd.f32 %v1532_v24, %v434_v36 }
  0xa2   : > { %v510_v37 = vmul.f32 %v1545_v33, %v1545_v33  ;;  %v518_v38 = vmul.f32 %v1548_v34, %v1548_v34 }
  0xa3   : > { %v495_v48 = vmul.f32 %v1555_v39, %v1555_v39  ;;  %v503_v58 = vmul.f32 %v1573_v50, %v1573_v50 }
  0xa4   : > { %558 = vadd.xlane.f32.xlu1 %v510_v37 }
  0xa5   : > { %574 = vadd.xlane.f32.xlu0 %v518_v38 }
  0xa7   : > { %v454_v40 = vpop.f32.mrf.mxu2  ;;  %v474_v41 = vpop.f32.mrf.mxu3 }
  0xa8   : > { %v1558_v42 = vadd.f32 %v1532_v24, %v454_v40  ;;  %v1561_v43 = vadd.f32 %v1532_v24, %v474_v41  ;;  %v417_v44 = vpop.f32.mrf.mxu0  ;;  %v437_v45 = vpop.f32.mrf.mxu1 }
  0xa9   : > { %v1570_v49 = vadd.f32 %v1532_v24, %v417_v44  ;;  %v1585_v59 = vadd.f32 %v1532_v24, %v437_v45 }
  0xaa   : > { %v519_v46 = vmul.f32 %v1561_v43, %v1561_v43  ;;  %v511_v47 = vmul.f32 %v1558_v42, %v1558_v42 }
  0xab   : > { %v496_v54 = vmul.f32 %v1570_v49, %v1570_v49  ;;  %v504_v0 = vmul.f32 %v1585_v59, %v1585_v59 }
  0xac   : > { %576 = vadd.xlane.f32.xlu1 %v519_v46  ;;  %560 = vadd.xlane.f32.xlu2 %v511_v47 }
  0xad   : > { %528 = vadd.xlane.f32.xlu0 %v495_v48 }
  0xaf   : > { %v477_v51 = vpop.f32.mrf.mxu3  ;;  %v457_v52 = vpop.f32.mrf.mxu2 }
  0xb0   : > { %v1576_v53 = vadd.f32 %v1532_v24, %v477_v51  ;;  %v419_v55 = vpop.f32.mrf.mxu0  ;;  %v439_v56 = vpop.f32.mrf.mxu1  ;;  %v1591_v61 = vadd.f32 %v1532_v24, %v457_v52 }
  0xb1   : > { %v1588_v60 = vadd.f32 %v1532_v24, %v439_v56  ;;  %v1603_v6 = vadd.f32 %v1532_v24, %v419_v55 }
  0xb2   : > { %v520_v57 = vmul.f32 %v1576_v53, %v1576_v53  ;;  %v512_v1 = vmul.f32 %v1591_v61, %v1591_v61 }
  0xb3   : > { %v505_v63 = vmul.f32 %v1588_v60, %v1588_v60  ;;  %v497_v10 = vmul.f32 %v1603_v6, %v1603_v6 }
  0xb4   : > { %578 = vadd.xlane.f32.xlu2 %v520_v57  ;;  %530 = vadd.xlane.f32.xlu1 %v496_v54 }
  0xb5   : > { %544 = vadd.xlane.f32.xlu0 %v503_v58 }
  0xb7   : > { %v459_v62 = vpop.f32.mrf.mxu2  ;;  %v479_v3 = vpop.f32.mrf.mxu3 }
  0xb8   : > { %v422_v2 = vpop.f32.mrf.mxu0  ;;  %v442_v5 = vpop.f32.mrf.mxu1  ;;  %v1606_v7 = vadd.f32 %v1532_v24, %v479_v3  ;;  %v1621_v14 = vadd.f32 %v1532_v24, %v459_v62 }
  0xb9   : > { %v1600_v4 = vadd.f32 %v1532_v24, %v422_v2  ;;  %v1618_v13 = vadd.f32 %v1532_v24, %v442_v5 }
  0xba   : > { %v521_v11 = vmul.f32 %v1606_v7, %v1606_v7  ;;  %v513_v19 = vmul.f32 %v1621_v14, %v1621_v14 }
  0xbb   : > { %v498_v9 = vmul.f32 %v1600_v4, %v1600_v4  ;;  %v506_v18 = vmul.f32 %v1618_v13, %v1618_v13 }
  0xbc   : > { %548 = vadd.xlane.f32.xlu2 %v505_v63  ;;  %546 = vadd.xlane.f32.xlu1 %v504_v0 }
  0xbd   : > { %562 = vadd.xlane.f32.xlu0 %v512_v1 }
  0xbf   : > { %v462_v8 = vpop.f32.mrf.mxu2  ;;  %v482_v21 = vpop.f32.mrf.mxu3 }
  0xc0   : > { %v1615_v12 = vadd.f32 %v1532_v24, %v462_v8  ;;  %v444_v15 = vpop.f32.mrf.mxu1  ;;  %v424_v20 = vpop.f32.mrf.mxu0  ;;  %v1630_v22 = vadd.f32 %v1532_v24, %v482_v21 }
  0xc1   : > { %v1633_v23 = vadd.f32 %v1532_v24, %v424_v20  ;;  %v1651_v38 = vadd.f32 %v1532_v24, %v444_v15 }
  0xc2   : > { %v514_v17 = vmul.f32 %v1615_v12, %v1615_v12  ;;  %v522_v29 = vmul.f32 %v1630_v22, %v1630_v22 }
  0xc3   : > { %v499_v31 = vmul.f32 %v1633_v23, %v1633_v23  ;;  %v507_v46 = vmul.f32 %v1651_v38, %v1651_v38 }
  0xc4   : > { %534 = vadd.xlane.f32.xlu2 %v498_v9  ;;  %532 = vadd.xlane.f32.xlu1 %v497_v10 }
  0xc5   : > { %580 = vadd.xlane.f32.xlu0 %v521_v11 }
  0xc7   : > { %v464_v16 = vpop.f32.mrf.mxu2  ;;  %v484_v41 = vpop.f32.mrf.mxu3 }
  0xc8   : > { %v1636_v25 = vadd.f32 %v1532_v24, %v464_v16  ;;  %v447_v30 = vpop.f32.mrf.mxu1  ;;  %v427_v35 = vpop.f32.mrf.mxu0  ;;  %v1675_v62 = vadd.f32 %v1532_v24, %v484_v41 }
  0xc9   : > { %v1645_v36 = vadd.f32 %v1532_v24, %v447_v30  ;;  %v1648_v37 = vadd.f32 %v1532_v24, %v427_v35 }
  0xca   : > { %v515_v32 = vmul.f32 %v1636_v25, %v1636_v25  ;;  %v523_v1 = vmul.f32 %v1675_v62, %v1675_v62 }
  0xcb   : > { %v508_v40 = vmul.f32 %v1645_v36, %v1645_v36  ;;  %v500_v44 = vmul.f32 %v1648_v37, %v1648_v37 }
  0xcc   : > { %566 = vadd.xlane.f32.xlu2 %v514_v17  ;;  %564 = vadd.xlane.f32.xlu1 %v513_v19 }
  0xcd   : > { %550 = vadd.xlane.f32.xlu0 %v506_v18 }
  0xcf   : > { %v467_v26 = vpop.f32.mrf.mxu2  ;;  %v487_v56 = vpop.f32.mrf.mxu3 }
  0xd0   : > { %v1660_v47 = vadd.f32 %v1532_v24, %v467_v26  ;;  %v449_v48 = vpop.f32.mrf.mxu1  ;;  %v429_v57 = vpop.f32.mrf.mxu0  ;;  %v1681_v0 = vadd.f32 %v1532_v24, %v487_v56 }
  0xd1   : > { %v1666_v52 = vadd.f32 %v1532_v24, %v449_v48  ;;  %v1678_v63 = vadd.f32 %v1532_v24, %v429_v57 }
  0xd2   : > { %v516_v55 = vmul.f32 %v1660_v47, %v1660_v47  ;;  %v524_v5 = vmul.f32 %v1681_v0, %v1681_v0 }
  0xd3   : > { %v509_v58 = vmul.f32 %v1666_v52, %v1666_v52  ;;  %v501_v2 = vmul.f32 %v1678_v63, %v1678_v63 }
  0xd4   : > { %536 = vadd.xlane.f32.xlu2 %v499_v31  ;;  %582 = vadd.xlane.f32.xlu1 %v522_v29 }
  0xd5   : > { %568 = vadd.xlane.f32.xlu0 %v515_v32 }
  0xd7   : > { %v469_v45 = vpop.f32.mrf.mxu2  ;;  %v489_v3 = vpop.f32.mrf.mxu3 }
  0xd8   : > { %v1663_v51 = vadd.f32 %v1532_v24, %v469_v45  ;;  %v1690_v8 = vadd.f32 %v1532_v24, %v489_v3 }
  0xda   : > { %v517_v54 = vmul.f32 %v1663_v51, %v1663_v51  ;;  %v525_v9 = vmul.f32 %v1690_v8, %v1690_v8 }
  0xdc   : > { %554 = vadd.xlane.f32.xlu2 %v508_v40  ;;  %552 = vadd.xlane.f32.xlu1 %v507_v46 }
  0xdd   : > { %538 = vadd.xlane.f32.xlu0 %v500_v44 }
  0xe4   : > { %572 = vadd.xlane.f32.xlu2 %v517_v54  ;;  %570 = vadd.xlane.f32.xlu1 %v516_v55 }
  0xe5   : > { %556 = vadd.xlane.f32.xlu0 %v509_v58 }
  0xec   : > { %584 = vadd.xlane.f32.xlu2 %v523_v1  ;;  %540 = vadd.xlane.f32.xlu1 %v501_v2 }
  0xed   : > { %586 = vadd.xlane.f32.xlu0 %v524_v5 }
  0xf4   : > { %588 = vadd.xlane.f32.xlu1 %v525_v9 }
 0x110   : > { %v543_v10 = vpop.xlane.xlu2 %542  ;;  %v527_v11 = vpop.xlane.xlu0 %526 }
 0x111   : > { %v598_v15 = vmax.f32 %v543_v10, 1e-24  ;;  %v590_v16 = vmax.f32 %v527_v11, 1e-24  ;;  %v1716_v10 = vstv %s492_s8 }
 0x113   : > { %1351 = vrsqrt.f32 %v598_v15  ;;  %vm708_vm3 = vweird.f32 %v598_v15  ;;  %vm628_vm5 = vweird.f32 %v590_v16 }
 0x114   : > { %1353 = vrsqrt.f32 %v590_v16 }
 0x117   : > { %v559_v17 = vpop.xlane.xlu1 %558 }
 0x118   : > { %v1694_v18 = vmax.f32 %v559_v17, 1e-24  ;;  %v575_v19 = vpop.xlane.xlu0 %574 }
 0x119   : > { %v1352_v20 = vpop.eup %1351  ;;  %v1696_v21 = vmax.f32 %v575_v19, 1e-24 }
 0x11a   : > { %v1354_v26 = vpop.eup %1353  ;;  %v703_v24 = vmul.f32 %v1352_v20, %v598_v15  ;;  %1355 = vrsqrt.f32 %v1694_v18  ;;  %vm709_vm4 = vweird.f32 %v1352_v20  ;;  %vm788_vm9 = vweird.f32 %v1694_v18 }
 0x11b   : > { %v623_v29 = vmul.f32 %v1354_v26, %v590_v16  ;;  %1357 = vrsqrt.f32 %v1696_v21  ;;  %vm1706_vm6 = vmor %vm708_vm3, %vm709_vm4  ;;  %vm629_vm7 = vweird.f32 %v1354_v26  ;;  %vm868_vm11 = vweird.f32 %v1696_v21 }
 0x11c   : > { %v704_v30 = vmul.f32 %v1352_v20, %v703_v24  ;;  %vm630_vm8 = vmor %vm628_vm5, %vm629_vm7 }
 0x11d   : > { %v624_v31 = vmul.f32 %v1354_v26, %v623_v29  ;;  %v1724_v29 = vstv %s1700_s9 }
 0x11e   : > { %v705_v32 = vmul.f32 0.5, %v704_v30 }
 0x11f   : > { %v625_v35 = vmul.f32 0.5, %v624_v31  ;;  %v577_v40 = vpop.xlane.xlu1 %576  ;;  %v561_v41 = vpop.xlane.xlu2 %560 }
 0x120   : > { %v1356_v44 = vpop.eup %1355  ;;  %v706_v45 = vsub.f32 1.5, %v705_v32  ;;  %v1702_v46 = vmax.f32 %v577_v40, 1e-24  ;;  %v1704_v48 = vmax.f32 %v561_v41, 1e-24  ;;  %v529_v54 = vpop.xlane.xlu0 %528 }
 0x121   : > { %v1358_v55 = vpop.eup %1357  ;;  %v626_v57 = vsub.f32 1.5, %v625_v35  ;;  %v783_v58 = vmul.f32 %v1356_v44, %v1694_v18  ;;  %v1711_v1 = vmax.f32 %v529_v54, 1e-24  ;;  %vm789_vm10 = vweird.f32 %v1356_v44 }
 0x122   : > { %v707_v2 = vmul.f32 %v1352_v20, %v706_v45  ;;  %v863_v3 = vmul.f32 %v1358_v55, %v1696_v21  ;;  %1359 = vrsqrt.f32 %v1702_v46  ;;  %vm869_vm12 = vweird.f32 %v1358_v55  ;;  %vm790_vm14 = vmor %vm788_vm9, %vm789_vm10 }
 0x123   : > { %v627_v5 = vmul.f32 %v1354_v26, %v626_v57  ;;  %v784_v9 = vmul.f32 %v1356_v44, %v783_v58  ;;  %1361 = vrsqrt.f32 %v1704_v48  ;;  %vm878_vm13 = vweird.f32 %v1702_v46  ;;  %vm870_vm0 = vmor %vm868_vm11, %vm869_vm12 }
 0x124   : > { %v711_v11 = vsel %vm1706_vm6, %v1352_v20, %v707_v2  ;;  %v864_v15 = vmul.f32 %v1358_v55, %v863_v3  ;;  %1363 = vrsqrt.f32 %v1711_v1  ;;  %vm798_vm15 = vweird.f32 %v1704_v48 }
 0x125   : > { %v950_v17 = vmul.f32 %v711_v11, %v1538_v28  ;;  %v631_v19 = vsel %vm630_vm8, %v1354_v26, %v627_v5  ;;  %v785_v24 = vmul.f32 0.5, %v784_v9  ;;  %vm638_vm5 = vweird.f32 %v1711_v1 }
 0x126   : > { %v942_v30 = vmul.f32 %v631_v19, %v1535_v27  ;;  %v865_v31 = vmul.f32 0.5, %v864_v15 }
 0x127   : > { %v983_v32 = vmul.f32 %v1716_v10, %v950_v17  ;;  %v786_v35 = vsub.f32 1.5, %v785_v24  ;;  %v579_v16 = vpop.xlane.xlu2 %578  ;;  %v531_v20 = vpop.xlane.xlu1 %530 }
 0x128   : > { %v1729_v40 = vpop.eup %1359  ;;  %v975_v28 = vmul.f32 %v1716_v10, %v942_v30  ;;  %v866_v26 = vsub.f32 1.5, %v865_v31  ;;  %v1740_v56 = vmax.f32 %v579_v16, 1e-24  ;;  %v1751_v5 = vmax.f32 %v531_v20, 1e-24 }
 0x129   : > { %v1733_v41 = vpop.eup %1361  ;;  %v1016_v27 = vadd.f32 %v1724_v29, %v983_v32  ;;  %v787_v45 = vmul.f32 %v1356_v44, %v786_v35  ;;  %v873_v54 = vmul.f32 %v1729_v40, %v1702_v46  ;;  %v545_v35 = vpop.xlane.xlu0 %544  ;;  %vm879_vm1 = vweird.f32 %v1729_v40 }
 0x12a   : > { %v1742_v57 = vpop.eup %1363  ;;  %v1008_v58 = vadd.f32 %v1724_v29, %v975_v28  ;;  %v867_v2 = vmul.f32 %v1358_v55, %v866_v26  ;;  %v793_v3 = vmul.f32 %v1733_v41, %v1704_v48  ;;  %1365 = vrsqrt.f32 %v1740_v56  ;;  %vm880_vm4 = vmor %vm878_vm13, %vm879_vm1 }
 0x12b   : > { %v1048_v9 = vmul.f32 0.2, %v1016_v27  ;;  %v791_v11 = vsel %vm790_vm14, %v1356_v44, %v787_v45  ;;  %v874_v15 = vmul.f32 %v1729_v40, %v873_v54  ;;  %v633_v18 = vmul.f32 %v1742_v57, %v1711_v1 }
 0x12c   : > { %v1040_v17 = vmul.f32 0.2, %v1008_v58  ;;  %v958_v19 = vmul.f32 %v791_v11, %v1545_v33  ;;  %v871_v24 = vsel %vm870_vm0, %v1358_v55, %v867_v2  ;;  %v794_v44 = vmul.f32 %v1733_v41, %v793_v3 }
 0x12d   : > { %v1080_v21 = vmax.f32 %v1016_v27, %v1048_v9  ;;  %v966_v30 = vmul.f32 %v871_v24, %v1548_v34  ;;  %v875_v31 = vmul.f32 0.5, %v874_v15  ;;  %v634_v32 = vmul.f32 %v1742_v57, %v633_v18 }
 0x12e   : > { %v1072_v16 = vmax.f32 %v1008_v58, %v1040_v17  ;;  %v991_v20 = vmul.f32 %v1716_v10, %v958_v19  ;;  %v795_v28 = vmul.f32 0.5, %v794_v44  ;;  %vm799_vm2 = vweird.f32 %v1733_v41 }
 0x12f   : > { %1112 = vst [vmem:[%s1762_s13 + $0x40] sm:$0xff] %v1080_v21  ;;  %v999_v33 = vmul.f32 %v1716_v10, %v966_v30  ;;  %v876_v55 = vsub.f32 1.5, %v875_v31  ;;  %v635_v26 = vmul.f32 0.5, %v634_v32  ;;  %1367 = vrsqrt.f32 %v1751_v5  ;;  %v549_v45 = vpop.xlane.xlu2 %548  ;;  %v547_v15 = vpop.xlane.xlu1 %546  ;;  %vm800_vm6 = vmor %vm798_vm15, %vm799_vm2 }
 0x130   : > { %1104 = vst [vmem:[%s1762_s13] sm:$0xff] %v1072_v16  ;;  %v1024_v34 = vadd.f32 %v1724_v29, %v991_v20  ;;  %v796_v27 = vsub.f32 1.5, %v795_v28  ;;  %vm639_vm3 = vweird.f32 %v1742_v57  ;;  %v1786_v11 = vmax.f32 %v545_v35, 1e-24 }
 0x131   : > { %v1032_v54 = vadd.f32 %v1724_v29, %v999_v33  ;;  %v877_v58 = vmul.f32 %v1729_v40, %v876_v55  ;;  %v636_v2 = vsub.f32 1.5, %v635_v26  ;;  %v1794_v46 = vmax.f32 %v549_v45, 1e-24  ;;  %vm640_vm7 = vmor %vm638_vm5, %vm639_vm3 }
 0x132   : > { %v1056_v3 = vmul.f32 0.2, %v1024_v34  ;;  %v797_v9 = vmul.f32 %v1733_v41, %v796_v27  ;;  %1369 = vrsqrt.f32 %v1786_v11  ;;  %v1805_v31 = vmax.f32 %v547_v15, 1e-24 }
 0x133   : > { %v1064_v18 = vmul.f32 0.2, %v1032_v54  ;;  %v881_v17 = vsel %vm880_vm4, %v1729_v40, %v877_v58  ;;  %v637_v19 = vmul.f32 %v1742_v57, %v636_v2  ;;  %v1801_v40 = vpop.eup %1365  ;;  %1371 = vrsqrt.f32 %v1794_v46 }
 0x134   : > { %v1088_v24 = vmax.f32 %v1024_v34, %v1056_v3  ;;  %v967_v1 = vmul.f32 %v881_v17, %v1561_v43  ;;  %v801_v44 = vsel %vm800_vm6, %v1733_v41, %v797_v9  ;;  %v883_v35 = vmul.f32 %v1801_v40, %v1740_v56 }
 0x135   : > { %v1096_v21 = vmax.f32 %v1032_v54, %v1064_v18  ;;  %v959_v48 = vmul.f32 %v801_v44, %v1558_v42  ;;  %v641_v30 = vsel %vm640_vm7, %v1742_v57, %v637_v19  ;;  %v1807_v32 = vpop.eup %1367  ;;  %v563_v57 = vpop.xlane.xlu0 %562  ;;  %vm888_vm8 = vweird.f32 %v1740_v56 }
 0x136   : > { %1120 = vst [vmem:[%s1762_s13 + $0x80] sm:$0xff] %v1088_v24  ;;  %v1000_v43 = vmul.f32 %v1716_v10, %v967_v1  ;;  %v943_v41 = vmul.f32 %v641_v30, %v1555_v39  ;;  %v643_v42 = vmul.f32 %v1807_v32, %v1751_v5  ;;  %v884_v33 = vmul.f32 %v1801_v40, %v883_v35 }
 0x137   : > { %1128 = vst [vmem:[%s1762_s13 + $0xc0] sm:$0xff] %v1096_v21  ;;  %v992_v16 = vmul.f32 %v1716_v10, %v959_v48  ;;  %vm648_vm9 = vweird.f32 %v1751_v5  ;;  %1373 = vrsqrt.f32 %v1805_v31  ;;  %v1830_v54 = vmax.f32 %v563_v57, 1e-24  ;;  %v535_v17 = vpop.xlane.xlu2 %534  ;;  %v533_v19 = vpop.xlane.xlu1 %532 }
 0x138   : > { %v1033_v20 = vadd.f32 %v1724_v29, %v1000_v43  ;;  %v976_v28 = vmul.f32 %v1716_v10, %v943_v41  ;;  %v644_v55 = vmul.f32 %v1807_v32, %v643_v42  ;;  %v1827_v26 = vpop.eup %1369  ;;  %v885_v45 = vmul.f32 0.5, %v884_v33 }
 0x139   : > { %v1025_v39 = vadd.f32 %v1724_v29, %v992_v16  ;;  %vm889_vm10 = vweird.f32 %v1801_v40  ;;  %v713_v3 = vmul.f32 %v1827_v26, %v1786_v11  ;;  %vm718_vm11 = vweird.f32 %v1786_v11  ;;  %v1837_v24 = vpop.eup %1371 }
 0x13a   : > { %v1065_v34 = vmul.f32 0.2, %v1033_v20  ;;  %v1009_v27 = vadd.f32 %v1724_v29, %v976_v28  ;;  %v645_v2 = vmul.f32 0.5, %v644_v55  ;;  %v886_v18 = vsub.f32 1.5, %v885_v45  ;;  %vm890_vm14 = vmor %vm888_vm8, %vm889_vm10 }
 0x13b   : > { %v1057_v58 = vmul.f32 0.2, %v1025_v39  ;;  %1375 = vrsqrt.f32 %v1830_v54  ;;  %vm649_vm12 = vweird.f32 %v1807_v32  ;;  %v714_v21 = vmul.f32 %v1827_v26, %v713_v3 }
 0x13c   : > { %v1097_v9 = vmax.f32 %v1033_v20, %v1065_v34  ;;  %v1041_v15 = vmul.f32 0.2, %v1009_v27  ;;  %v646_v44 = vsub.f32 1.5, %v645_v2  ;;  %v887_v30 = vmul.f32 %v1801_v40, %v886_v18  ;;  %vm650_vm0 = vmor %vm648_vm9, %vm649_vm12 }
 0x13d   : > { %v1089_v1 = vmax.f32 %v1025_v39, %v1057_v58  ;;  %v733_v43 = vmul.f32 %v1837_v24, %v1794_v46  ;;  %vm738_vm13 = vweird.f32 %v1794_v46  ;;  %v1846_v41 = vpop.eup %1373  ;;  %v715_v16 = vmul.f32 0.5, %v714_v21 }
 0x13e   : > { %1129 = vst [vmem:[%s1762_s13 + $0xc8] sm:$0xff] %v1097_v9  ;;  %v1073_v48 = vmax.f32 %v1009_v27, %v1041_v15  ;;  %v647_v35 = vmul.f32 %v1807_v32, %v646_v44  ;;  %vm719_vm15 = vweird.f32 %v1827_v26  ;;  %v1855_v42 = vmax.f32 %v535_v17, 1e-24 }
 0x13f   : > { %1121 = vst [vmem:[%s1762_s13 + $0x88] sm:$0xff] %v1089_v1  ;;  %v891_v57 = vsel %vm890_vm14, %v1801_v40, %v887_v30  ;;  %v734_v20 = vmul.f32 %v1837_v24, %v733_v43  ;;  %v723_v56 = vmul.f32 %v1846_v41, %v1805_v31  ;;  %vm728_vm1 = vweird.f32 %v1805_v31  ;;  %vm720_vm4 = vmor %vm718_vm11, %vm719_vm15  ;;  %v565_v11 = vpop.xlane.xlu1 %564 }
 0x140   : > { %1105 = vst [vmem:[%s1762_s13 + $0x8] sm:$0xff] %v1073_v48  ;;  %v1867_v28 = vmax.f32 %v533_v19, 1e-24  ;;  %v968_v33 = vmul.f32 %v891_v57, %v1576_v53  ;;  %v651_v39 = vsel %vm650_vm0, %v1807_v32, %v647_v35  ;;  %v716_v55 = vsub.f32 1.5, %v715_v16  ;;  %v581_v32 = vpop.xlane.xlu0 %580  ;;  %v567_v57 = vpop.xlane.xlu2 %566 }
 0x141   : > { %1377 = vrsqrt.f32 %v1855_v42  ;;  %v1376_v40 = vpop.eup %1375  ;;  %v944_v5 = vmul.f32 %v651_v39, %v1570_v49  ;;  %v735_v34 = vmul.f32 0.5, %v734_v20  ;;  %v724_v27 = vmul.f32 %v1846_v41, %v723_v56 }
 0x142   : > { %vm808_vm2 = vweird.f32 %v1830_v54  ;;  %v1001_v45 = vmul.f32 %v1716_v10, %v968_v33  ;;  %v717_v58 = vmul.f32 %v1827_v26, %v716_v55  ;;  %vm739_vm3 = vweird.f32 %v1837_v24 }
 0x143   : > { %v803_v53 = vmul.f32 %v1376_v40, %v1830_v54  ;;  %v977_v2 = vmul.f32 %v1716_v10, %v944_v5  ;;  %v736_v49 = vsub.f32 1.5, %v735_v34  ;;  %v725_v3 = vmul.f32 0.5, %v724_v27  ;;  %vm740_vm6 = vmor %vm738_vm13, %vm739_vm3 }
 0x144   : > { %1379 = vrsqrt.f32 %v1867_v28  ;;  %v1034_v9 = vadd.f32 %v1724_v29, %v1001_v45  ;;  %v721_v15 = vsel %vm720_vm4, %v1827_v26, %v717_v58  ;;  %vm729_vm5 = vweird.f32 %v1846_v41 }
 0x145   : > { %v804_v18 = vmul.f32 %v1376_v40, %v803_v53  ;;  %v1010_v17 = vadd.f32 %v1724_v29, %v977_v2  ;;  %v951_v19 = vmul.f32 %v721_v15, %v1573_v50  ;;  %v737_v1 = vmul.f32 %v1837_v24, %v736_v49  ;;  %vm730_vm8 = vmor %vm728_vm1, %vm729_vm5 }
 0x146   : > { %v726_v44 = vsub.f32 1.5, %v725_v3  ;;  %v1066_v48 = vmul.f32 0.2, %v1034_v9  ;;  %vm809_vm7 = vweird.f32 %v1376_v40  ;;  %v1897_v30 = vmax.f32 %v581_v32, 1e-24 }
 0x147   : > { %v1891_v21 = vpop.eup %1377  ;;  %v805_v26 = vmul.f32 0.5, %v804_v18  ;;  %v1042_v43 = vmul.f32 0.2, %v1010_v17  ;;  %v984_v50 = vmul.f32 %v1716_v10, %v951_v19  ;;  %v741_v35 = vsel %vm740_vm6, %v1837_v24, %v737_v1  ;;  %vm810_vm9 = vmor %vm808_vm2, %vm809_vm7 }
 0x148   : > { %v727_v16 = vmul.f32 %v1846_v41, %v726_v44  ;;  %v1098_v20 = vmax.f32 %v1034_v9, %v1066_v48  ;;  %v953_v56 = vmul.f32 %v741_v35, %v1588_v60  ;;  %v663_v33 = vmul.f32 %v1891_v21, %v1855_v42  ;;  %v551_v2 = vpop.xlane.xlu0 %550 }
 0x149   : > { %v806_v46 = vsub.f32 1.5, %v805_v26  ;;  %v1074_v55 = vmax.f32 %v1010_v17, %v1042_v43  ;;  %v1017_v24 = vadd.f32 %v1724_v29, %v984_v50  ;;  %vm668_vm10 = vweird.f32 %v1855_v42 }
 0x14a   : > { %v1909_v39 = vpop.eup %1379  ;;  %v731_v5 = vsel %vm730_vm8, %v1846_v41, %v727_v16  ;;  %1130 = vst [vmem:[%s1762_s13 + $0xd0] sm:$0xff] %v1098_v20  ;;  %v986_v34 = vmul.f32 %v1716_v10, %v953_v56  ;;  %v664_v31 = vmul.f32 %v1891_v21, %v663_v33  ;;  %1381 = vrsqrt.f32 %v1897_v30  ;;  %v537_v16 = vpop.xlane.xlu2 %536 }
 0x14b   : > { %v952_v60 = vmul.f32 %v731_v5, %v1585_v59  ;;  %v807_v27 = vmul.f32 %v1376_v40, %v806_v46  ;;  %1106 = vst [vmem:[%s1762_s13 + $0x10] sm:$0xff] %v1074_v55  ;;  %v1049_v45 = vmul.f32 0.2, %v1017_v24  ;;  %v653_v41 = vmul.f32 %v1909_v39, %v1867_v28 }
 0x14c   : > { %v1019_v58 = vadd.f32 %v1724_v29, %v986_v34  ;;  %v665_v32 = vmul.f32 0.5, %v664_v31  ;;  %vm669_vm11 = vweird.f32 %v1891_v21  ;;  %v1931_v17 = vmax.f32 %v567_v57, 1e-24 }
 0x14d   : > { %v985_v59 = vmul.f32 %v1716_v10, %v952_v60  ;;  %v811_v53 = vsel %vm810_vm9, %v1376_v40, %v807_v27  ;;  %v1081_v49 = vmax.f32 %v1017_v24, %v1049_v45  ;;  %v654_v54 = vmul.f32 %v1909_v39, %v653_v41  ;;  %vm670_vm12 = vmor %vm668_vm10, %vm669_vm11 }
 0x14e   : > { %v960_v3 = vmul.f32 %v811_v53, %v1591_v61  ;;  %v1051_v9 = vmul.f32 0.2, %v1019_v58  ;;  %v666_v18 = vsub.f32 1.5, %v665_v32  ;;  %v1935_v1 = vmax.f32 %v565_v11, 1e-24  ;;  %v583_v61 = vpop.xlane.xlu1 %582 }
 0x14f   : > { %v1018_v15 = vadd.f32 %v1724_v29, %v985_v59  ;;  %1113 = vst [vmem:[%s1762_s13 + $0x48] sm:$0xff] %v1081_v49  ;;  %v655_v40 = vmul.f32 0.5, %v654_v54  ;;  %v1937_v44 = vmax.f32 %v551_v2, 1e-24  ;;  %1383 = vrsqrt.f32 %v1931_v17 }
 0x150   : > { %v993_v19 = vmul.f32 %v1716_v10, %v960_v3  ;;  %v1083_v48 = vmax.f32 %v1019_v58, %v1051_v9  ;;  %v667_v43 = vmul.f32 %v1891_v21, %v666_v18  ;;  %v1941_v50 = vpop.eup %1381  ;;  %vm659_vm13 = vweird.f32 %v1909_v39  ;;  %v569_v31 = vpop.xlane.xlu0 %568 }
 0x151   : > { %v1050_v26 = vmul.f32 0.2, %v1018_v15  ;;  %v656_v11 = vsub.f32 1.5, %v655_v40  ;;  %1385 = vrsqrt.f32 %v1935_v1  ;;  %v893_v56 = vmul.f32 %v1941_v50, %v1897_v30 }
 0x152   : > { %v1026_v35 = vadd.f32 %v1724_v29, %v993_v19  ;;  %1115 = vst [vmem:[%s1762_s13 + $0x58] sm:$0xff] %v1083_v48  ;;  %v671_v20 = vsel %vm670_vm12, %v1891_v21, %v667_v43  ;;  %vm658_vm14 = vweird.f32 %v1867_v28  ;;  %vm898_vm0 = vweird.f32 %v1897_v30 }
 0x153   : > { %v1082_v57 = vmax.f32 %v1018_v15, %v1050_v26  ;;  %v946_v33 = vmul.f32 %v671_v20, %v1600_v4  ;;  %v657_v55 = vmul.f32 %v1909_v39, %v656_v11  ;;  %vm660_vm15 = vmor %vm658_vm14, %vm659_vm13  ;;  %v894_v42 = vmul.f32 %v1941_v50, %v893_v56 }
 0x154   : > { %v1058_v46 = vmul.f32 0.2, %v1026_v35  ;;  %1387 = vrsqrt.f32 %v1937_v44  ;;  %v1961_v21 = vmax.f32 %v537_v16, 1e-24  ;;  %v1965_v34 = vmax.f32 %v583_v61, 1e-24  ;;  %v555_v61 = vpop.xlane.xlu2 %554 }
 0x155   : > { %1114 = vst [vmem:[%s1762_s13 + $0x50] sm:$0xff] %v1082_v57  ;;  %v979_v5 = vmul.f32 %v1716_v10, %v946_v33  ;;  %v661_v4 = vsel %vm660_vm15, %v1909_v39, %v657_v55  ;;  %v1967_v60 = vpop.eup %1383  ;;  %v895_v27 = vmul.f32 0.5, %v894_v42  ;;  %vm828_vm1 = vweird.f32 %v1931_v17 }
 0x156   : > { %v1090_v24 = vmax.f32 %v1026_v35, %v1058_v46  ;;  %v945_v28 = vmul.f32 %v661_v4, %v1603_v6  ;;  %1389 = vrsqrt.f32 %v1961_v21  ;;  %vm899_vm2 = vweird.f32 %v1941_v50  ;;  %v1988_v49 = vpop.xlane.xlu1 %552 }
 0x157   : > { %v1972_v45 = vpop.eup %1385  ;;  %v1012_v41 = vadd.f32 %v1724_v29, %v979_v5  ;;  %v823_v39 = vmul.f32 %v1967_v60, %v1931_v17  ;;  %1391 = vrsqrt.f32 %v1965_v34  ;;  %v896_v58 = vsub.f32 1.5, %v895_v27  ;;  %vm900_vm6 = vmor %vm898_vm0, %vm899_vm2 }
 0x158   : > { %1122 = vst [vmem:[%s1762_s13 + $0x90] sm:$0xff] %v1090_v24  ;;  %v978_v6 = vmul.f32 %v1716_v10, %v945_v28  ;;  %v813_v59 = vmul.f32 %v1972_v45, %v1935_v1  ;;  %vm818_vm3 = vweird.f32 %v1935_v1  ;;  %vm748_vm4 = vweird.f32 %v1937_v44 }
 0x159   : > { %v1044_v53 = vmul.f32 0.2, %v1012_v41  ;;  %v824_v32 = vmul.f32 %v1967_v60, %v823_v39  ;;  %v1986_v2 = vmax.f32 %v569_v31, 1e-24  ;;  %v897_v9 = vmul.f32 %v1941_v50, %v896_v58 }
 0x15a   : > { %v1990_v3 = vpop.eup %1387  ;;  %v1011_v54 = vadd.f32 %v1724_v29, %v978_v6  ;;  %vm829_vm5 = vweird.f32 %v1967_v60  ;;  %v814_v15 = vmul.f32 %v1972_v45, %v813_v59  ;;  %vm819_vm7 = vweird.f32 %v1972_v45  ;;  %v539_v59 = vpop.xlane.xlu0 %538 }
 0x15b   : > { %v1076_v18 = vmax.f32 %v1012_v41, %v1044_v53  ;;  %v825_v19 = vmul.f32 0.5, %v824_v32  ;;  %v743_v40 = vmul.f32 %v1990_v3, %v1937_v44  ;;  %v901_v43 = vsel %vm900_vm6, %v1941_v50, %v897_v9  ;;  %vm830_vm10 = vmor %vm828_vm1, %vm829_vm5 }
 0x15c   : > { %v2003_v48 = vpop.eup %1389  ;;  %v1043_v26 = vmul.f32 0.2, %v1011_v54  ;;  %v815_v35 = vmul.f32 0.5, %v814_v15  ;;  %1393 = vrsqrt.f32 %v1986_v2  ;;  %v969_v30 = vmul.f32 %v901_v43, %v1606_v7  ;;  %vm820_vm13 = vmor %vm818_vm3, %vm819_vm7 }
 0x15d   : > { %v2007_v11 = vpop.eup %1391  ;;  %1108 = vst [vmem:[%s1762_s13 + $0x20] sm:$0xff] %v1076_v18  ;;  %v826_v16 = vsub.f32 1.5, %v825_v19  ;;  %v744_v57 = vmul.f32 %v1990_v3, %v743_v40  ;;  %v673_v20 = vmul.f32 %v2003_v48, %v1961_v21  ;;  %vm678_vm8 = vweird.f32 %v1961_v21  ;;  %v573_v40 = vpop.xlane.xlu2 %572 }
 0x15e   : > { %v1075_v56 = vmax.f32 %v1011_v54, %v1043_v26  ;;  %v816_v46 = vsub.f32 1.5, %v815_v35  ;;  %v903_v50 = vmul.f32 %v2007_v11, %v1965_v34  ;;  %vm908_vm9 = vweird.f32 %v1965_v34  ;;  %v571_v1 = vpop.xlane.xlu1 %570 }
 0x15f   : > { %v2018_v33 = vmax.f32 %v555_v61, 1e-24  ;;  %v1002_v55 = vmul.f32 %v1716_v10, %v969_v30  ;;  %v827_v7 = vmul.f32 %v1967_v60, %v826_v16  ;;  %v745_v42 = vmul.f32 0.5, %v744_v57 }
 0x160   : > { %v674_v24 = vmul.f32 %v2003_v48, %v673_v20  ;;  %1107 = vst [vmem:[%s1762_s13 + $0x18] sm:$0xff] %v1075_v56  ;;  %v817_v5 = vmul.f32 %v1972_v45, %v816_v46  ;;  %vm749_vm11 = vweird.f32 %v1990_v3  ;;  %vm679_vm12 = vweird.f32 %v2003_v48 }
 0x161   : > { %v904_v4 = vmul.f32 %v2007_v11, %v903_v50  ;;  %v1035_v28 = vadd.f32 %v1724_v29, %v1002_v55  ;;  %v831_v27 = vsel %vm830_vm10, %v1967_v60, %v827_v7  ;;  %v746_v31 = vsub.f32 1.5, %v745_v42  ;;  %vm750_vm14 = vmor %vm748_vm4, %vm749_vm11 }
 0x162   : > { %v675_v17 = vmul.f32 0.5, %v674_v24  ;;  %v2038_v41 = vpop.eup %1393  ;;  %v962_v39 = vmul.f32 %v831_v27, %v1615_v12  ;;  %v821_v6 = vsel %vm820_vm13, %v1972_v45, %v817_v5  ;;  %1395 = vrsqrt.f32 %v2018_v33  ;;  %vm680_vm1 = vmor %vm678_vm8, %vm679_vm12  ;;  %v557_v5 = vpop.xlane.xlu0 %556 }
 0x163   : > { %v905_v58 = vmul.f32 0.5, %v904_v4  ;;  %v1067_v53 = vmul.f32 0.2, %v1035_v28  ;;  %v961_v60 = vmul.f32 %v821_v6, %v1621_v14  ;;  %v747_v32 = vmul.f32 %v1990_v3, %v746_v31 }
 0x164   : > { %v676_v54 = vsub.f32 1.5, %v675_v17  ;;  %v995_v9 = vmul.f32 %v1716_v10, %v962_v39  ;;  %vm909_vm15 = vweird.f32 %v2007_v11  ;;  %v833_v45 = vmul.f32 %v2038_v41, %v1986_v2 }
 0x165   : > { %v906_v12 = vsub.f32 1.5, %v905_v58  ;;  %v1099_v15 = vmax.f32 %v1035_v28, %v1067_v53  ;;  %v994_v14 = vmul.f32 %v1716_v10, %v961_v60  ;;  %v751_v18 = vsel %vm750_vm14, %v1990_v3, %v747_v32  ;;  %vm910_vm2 = vmor %vm908_vm9, %vm909_vm15 }
 0x166   : > { %v677_v19 = vmul.f32 %v2003_v48, %v676_v54  ;;  %vm838_vm0 = vweird.f32 %v1986_v2  ;;  %v1028_v44 = vadd.f32 %v1724_v29, %v995_v9  ;;  %v954_v61 = vmul.f32 %v751_v18, %v1618_v13  ;;  %v541_v17 = vpop.xlane.xlu1 %540 }
 0x167   : > { %v907_v26 = vmul.f32 %v2007_v11, %v906_v12  ;;  %v834_v43 = vmul.f32 %v2038_v41, %v833_v45  ;;  %1131 = vst [vmem:[%s1762_s13 + $0xd8] sm:$0xff] %v1099_v15  ;;  %v1027_v3 = vadd.f32 %v1724_v29, %v994_v14  ;;  %vm839_vm3 = vweird.f32 %v2038_v41 }
 0x168   : > { %v681_v35 = vsel %vm680_vm1, %v2003_v48, %v677_v19  ;;  %v2074_v13 = vmax.f32 %v1988_v49, 1e-24  ;;  %v1396_v21 = vpop.eup %1395  ;;  %v1060_v30 = vmul.f32 0.2, %v1028_v44  ;;  %v987_v16 = vmul.f32 %v1716_v10, %v954_v61  ;;  %vm840_vm6 = vmor %vm838_vm0, %vm839_vm3 }
 0x169   : > { %v947_v57 = vmul.f32 %v681_v35, %v1633_v23  ;;  %v911_v20 = vsel %vm910_vm2, %v2007_v11, %v907_v26  ;;  %v1059_v48 = vmul.f32 0.2, %v1027_v3  ;;  %v835_v46 = vmul.f32 0.5, %v834_v43 }
 0x16a   : > { %v970_v56 = vmul.f32 %v911_v20, %v1630_v22  ;;  %v763_v34 = vmul.f32 %v1396_v21, %v2018_v33  ;;  %v1092_v50 = vmax.f32 %v1028_v44, %v1060_v30  ;;  %v1020_v49 = vadd.f32 %v1724_v29, %v987_v16  ;;  %v587_v35 = vpop.xlane.xlu0 %586 }
 0x16b   : > { %v980_v55 = vmul.f32 %v1716_v10, %v947_v57  ;;  %vm768_vm4 = vweird.f32 %v2018_v33  ;;  %v1091_v7 = vmax.f32 %v1027_v3, %v1059_v48  ;;  %v836_v23 = vsub.f32 1.5, %v835_v46 }
 0x16c   : > { %v1003_v42 = vmul.f32 %v1716_v10, %v970_v56  ;;  %v764_v24 = vmul.f32 %v1396_v21, %v763_v34  ;;  %1124 = vst [vmem:[%s1762_s13 + $0xa0] sm:$0xff] %v1092_v50  ;;  %v1052_v11 = vmul.f32 0.2, %v1020_v49  ;;  %vm769_vm5 = vweird.f32 %v1396_v21 }
 0x16d   : > { %v1013_v22 = vadd.f32 %v1724_v29, %v980_v55  ;;  %1397 = vrsqrt.f32 %v2074_v13  ;;  %1123 = vst [vmem:[%s1762_s13 + $0x98] sm:$0xff] %v1091_v7  ;;  %v837_v28 = vmul.f32 %v2038_v41, %v836_v23  ;;  %v2091_v31 = vmax.f32 %v539_v59, 1e-24  ;;  %v585_v59 = vpop.xlane.xlu2 %584  ;;  %vm770_vm7 = vmor %vm768_vm4, %vm769_vm5 }
 0x16e   : > { %v1036_v4 = vadd.f32 %v1724_v29, %v1003_v42  ;;  %v765_v27 = vmul.f32 0.5, %v764_v24  ;;  %v1084_v39 = vmax.f32 %v1020_v49, %v1052_v11  ;;  %v2097_v58 = vmax.f32 %v573_v40, 1e-24  ;;  %v589_v57 = vpop.xlane.xlu1 %588 }
 0x16f   : > { %v1045_v6 = vmul.f32 0.2, %v1013_v22  ;;  %v2099_v53 = vmax.f32 %v571_v1, 1e-24  ;;  %v841_v32 = vsel %vm840_vm6, %v2038_v41, %v837_v28  ;;  %1399 = vrsqrt.f32 %v2091_v31 }
 0x170   : > { %v1068_v60 = vmul.f32 0.2, %v1036_v4  ;;  %v766_v54 = vsub.f32 1.5, %v765_v27  ;;  %1116 = vst [vmem:[%s1762_s13 + $0x60] sm:$0xff] %v1084_v39  ;;  %v963_v12 = vmul.f32 %v841_v32, %v1636_v25  ;;  %1401 = vrsqrt.f32 %v2097_v58 }
 0x171   : > { %v1077_v9 = vmax.f32 %v1013_v22, %v1045_v6  ;;  %1403 = vrsqrt.f32 %v2099_v53  ;;  %v2114_v15 = vmax.f32 %v557_v5, 1e-24  ;;  %v2116_v14 = vmax.f32 %v585_v59, 1e-24 }
 0x172   : > { %v1100_v2 = vmax.f32 %v1036_v4, %v1068_v60  ;;  %v767_v45 = vmul.f32 %v1396_v21, %v766_v54  ;;  %v996_v41 = vmul.f32 %v1716_v10, %v963_v12  ;;  %v2121_v19 = vmax.f32 %v541_v17, 1e-24 }
 0x173   : > { %v2107_v1 = vpop.eup %1397  ;;  %1109 = vst [vmem:[%s1762_s13 + $0x28] sm:$0xff] %v1077_v9  ;;  %vm758_vm8 = vweird.f32 %v2074_v13  ;;  %1405 = vrsqrt.f32 %v2114_v15  ;;  %vm688_vm10 = vweird.f32 %v2091_v31  ;;  %vm858_vm12 = vweird.f32 %v2097_v58 }
 0x174   : > { %1132 = vst [vmem:[%s1762_s13 + $0xe0] sm:$0xff] %v1100_v2  ;;  %v771_v25 = vsel %vm770_vm7, %v1396_v21, %v767_v45  ;;  %v753_v18 = vmul.f32 %v2107_v1, %v2074_v13  ;;  %v1029_v40 = vadd.f32 %v1724_v29, %v996_v41  ;;  %vm759_vm9 = vweird.f32 %v2107_v1 }
 0x175   : > { %v956_v44 = vmul.f32 %v771_v25, %v1645_v36  ;;  %v2127_v33 = vpop.eup %1399  ;;  %1407 = vrsqrt.f32 %v2116_v14  ;;  %vm848_vm14 = vweird.f32 %v2099_v53  ;;  %v2153_v49 = vmax.f32 %v587_v35, 1e-24  ;;  %vm760_vm2 = vmor %vm758_vm8, %vm759_vm9 }
 0x176   : > { %v754_v61 = vmul.f32 %v2107_v1, %v753_v18  ;;  %v2133_v26 = vpop.eup %1401  ;;  %v1061_v43 = vmul.f32 0.2, %v1029_v40  ;;  %v683_v36 = vmul.f32 %v2127_v33, %v2091_v31  ;;  %vm689_vm11 = vweird.f32 %v2127_v33 }
 0x177   : > { %v989_v3 = vmul.f32 %v1716_v10, %v956_v44  ;;  %v2139_v21 = vpop.eup %1403  ;;  %v853_v16 = vmul.f32 %v2133_v26, %v2097_v58  ;;  %vm859_vm13 = vweird.f32 %v2133_v26  ;;  %1409 = vrsqrt.f32 %v2121_v19  ;;  %vm690_vm5 = vmor %vm688_vm10, %vm689_vm11 }
 0x178   : > { %v755_v30 = vmul.f32 0.5, %v754_v61  ;;  %v1093_v20 = vmax.f32 %v1029_v40, %v1061_v43  ;;  %v684_v56 = vmul.f32 %v2127_v33, %v683_v36  ;;  %v843_v46 = vmul.f32 %v2139_v21, %v2099_v53  ;;  %vm860_vm8 = vmor %vm858_vm12, %vm859_vm13 }
 0x179   : > { %v1022_v48 = vadd.f32 %v1724_v29, %v989_v3  ;;  %v854_v50 = vmul.f32 %v2133_v26, %v853_v16  ;;  %vm849_vm15 = vweird.f32 %v2139_v21  ;;  %v2155_v55 = vpop.eup %1405  ;;  %v2159_v24 = vmax.f32 %v589_v57, 1e-24 }
 0x17a   : > { %v756_v34 = vsub.f32 1.5, %v755_v30  ;;  %1125 = vst [vmem:[%s1762_s13 + $0xa8] sm:$0xff] %v1093_v20  ;;  %v685_v42 = vmul.f32 0.5, %v684_v56  ;;  %v844_v23 = vmul.f32 %v2139_v21, %v843_v46  ;;  %v773_v4 = vmul.f32 %v2155_v55, %v2114_v15  ;;  %vm850_vm9 = vmor %vm848_vm14, %vm849_vm15 }
 0x17b   : > { %v1054_v7 = vmul.f32 0.2, %v1022_v48  ;;  %v2161_v11 = vpop.eup %1407  ;;  %v855_v5 = vmul.f32 0.5, %v854_v50  ;;  %vm778_vm0 = vweird.f32 %v2114_v15  ;;  %vm779_vm1 = vweird.f32 %v2155_v55 }
 0x17c   : > { %v757_v22 = vmul.f32 %v2107_v1, %v756_v34  ;;  %v686_v27 = vsub.f32 1.5, %v685_v42  ;;  %v845_v17 = vmul.f32 0.5, %v844_v23  ;;  %v913_v39 = vmul.f32 %v2161_v11, %v2116_v14  ;;  %vm780_vm10 = vmor %vm778_vm0, %vm779_vm1 }
 0x17d   : > { %v1086_v28 = vmax.f32 %v1022_v48, %v1054_v7  ;;  %vm918_vm3 = vweird.f32 %v2116_v14  ;;  %v2175_v6 = vpop.eup %1409  ;;  %v856_v32 = vsub.f32 1.5, %v855_v5  ;;  %v774_v54 = vmul.f32 %v2155_v55, %v773_v4 }
 0x17e   : > { %v761_v60 = vsel %vm760_vm2, %v2107_v1, %v757_v22  ;;  %vm919_vm4 = vweird.f32 %v2161_v11  ;;  %v687_v59 = vmul.f32 %v2127_v33, %v686_v27  ;;  %v846_v9 = vsub.f32 1.5, %v845_v17 }
 0x17f   : > { %1118 = vst [vmem:[%s1762_s13 + $0x70] sm:$0xff] %v1086_v28  ;;  %v955_v13 = vmul.f32 %v761_v60, %v1651_v38  ;;  %v914_v12 = vmul.f32 %v2161_v11, %v913_v39  ;;  %v857_v2 = vmul.f32 %v2133_v26, %v856_v32  ;;  %v775_v45 = vmul.f32 0.5, %v774_v54  ;;  %vm920_vm11 = vmor %vm918_vm3, %vm919_vm4 }
 0x180   : > { %v693_v1 = vmul.f32 %v2175_v6, %v2121_v19  ;;  %vm698_vm6 = vweird.f32 %v2121_v19  ;;  %vm699_vm7 = vweird.f32 %v2175_v6  ;;  %v691_v41 = vsel %vm690_vm5, %v2127_v33, %v687_v59 }
 0x181   : > { %v988_v38 = vmul.f32 %v1716_v10, %v955_v13  ;;  %v847_v31 = vmul.f32 %v2139_v21, %v846_v9  ;;  %v915_v25 = vmul.f32 0.5, %v914_v12  ;;  %v948_v18 = vmul.f32 %v691_v41, %v1648_v37  ;;  %vm700_vm12 = vmor %vm698_vm6, %vm699_vm7 }
 0x182   : > { %v861_v40 = vsel %vm860_vm8, %v2133_v26, %v857_v2  ;;  %v776_v44 = vsub.f32 1.5, %v775_v45  ;;  %v694_v33 = vmul.f32 %v2175_v6, %v693_v1  ;;  %1411 = vrsqrt.f32 %v2153_v49 }
 0x183   : > { %v1021_v61 = vadd.f32 %v1724_v29, %v988_v38  ;;  %v965_v58 = vmul.f32 %v861_v40, %v1663_v51  ;;  %v851_v43 = vsel %vm850_vm9, %v2139_v21, %v847_v31  ;;  %v916_v3 = vsub.f32 1.5, %v915_v25 }
 0x184   : > { %v981_v36 = vmul.f32 %v1716_v10, %v948_v18  ;;  %v964_v37 = vmul.f32 %v851_v43, %v1660_v47  ;;  %v777_v26 = vmul.f32 %v2155_v55, %v776_v44  ;;  %v695_v35 = vmul.f32 0.5, %v694_v33 }
 0x185   : > { %v1053_v30 = vmul.f32 0.2, %v1021_v61  ;;  %v998_v53 = vmul.f32 %v1716_v10, %v965_v58  ;;  %v917_v51 = vmul.f32 %v2161_v11, %v916_v3  ;;  %1413 = vrsqrt.f32 %v2159_v24 }
 0x186   : > { %v1014_v21 = vadd.f32 %v1724_v29, %v981_v36  ;;  %v997_v47 = vmul.f32 %v1716_v10, %v964_v37  ;;  %v781_v16 = vsel %vm780_vm10, %v2155_v55, %v777_v26  ;;  %v696_v57 = vsub.f32 1.5, %v695_v35 }
 0x187   : > { %v1085_v20 = vmax.f32 %v1021_v61, %v1053_v30  ;;  %v1031_v15 = vadd.f32 %v1724_v29, %v998_v53  ;;  %v957_v48 = vmul.f32 %v781_v16, %v1666_v52  ;;  %v921_v56 = vsel %vm920_vm11, %v2161_v11, %v917_v51 }
 0x188   : > { %v1046_v46 = vmul.f32 0.2, %v1014_v21  ;;  %v1030_v34 = vadd.f32 %v1724_v29, %v997_v47  ;;  %v971_v50 = vmul.f32 %v921_v56, %v1675_v62  ;;  %v697_v55 = vmul.f32 %v2175_v6, %v696_v57  ;;  %v1412_v11 = vpop.eup %1411 }
 0x189   : > { %1117 = vst [vmem:[%s1762_s13 + $0x68] sm:$0xff] %v1085_v20  ;;  %v1063_v7 = vmul.f32 0.2, %v1031_v15  ;;  %v990_v14 = vmul.f32 %v1716_v10, %v957_v48  ;;  %v923_v27 = vmul.f32 %v1412_v11, %v2153_v49  ;;  %vm929_vm13 = vweird.f32 %v1412_v11 }
 0x18a   : > { %v1078_v52 = vmax.f32 %v1014_v21, %v1046_v46  ;;  %v1062_v42 = vmul.f32 0.2, %v1030_v34  ;;  %v1004_v23 = vmul.f32 %v1716_v10, %v971_v50  ;;  %v701_v62 = vsel %vm700_vm12, %v2175_v6, %v697_v55 }
 0x18b   : > { %v1095_v22 = vmax.f32 %v1031_v15, %v1063_v7  ;;  %v1023_v5 = vadd.f32 %v1724_v29, %v990_v14  ;;  %v949_v4 = vmul.f32 %v701_v62, %v1678_v63  ;;  %v924_v60 = vmul.f32 %v1412_v11, %v923_v27  ;;  %v1414_v32 = vpop.eup %1413 }
 0x18c   : > { %1110 = vst [vmem:[%s1762_s13 + $0x30] sm:$0xff] %v1078_v52  ;;  %v1094_v28 = vmax.f32 %v1030_v34, %v1062_v42  ;;  %v1037_v19 = vadd.f32 %v1724_v29, %v1004_v23  ;;  %v933_v9 = vmul.f32 %v1414_v32, %v2159_v24  ;;  %vm928_vm14 = vweird.f32 %v2153_v49 }
 0x18d   : > { %1127 = vst [vmem:[%s1762_s13 + $0xb8] sm:$0xff] %v1095_v22  ;;  %v1055_v17 = vmul.f32 0.2, %v1023_v5  ;;  %v982_v39 = vmul.f32 %v1716_v10, %v949_v4  ;;  %v925_v59 = vmul.f32 0.5, %v924_v60  ;;  %vm930_vm15 = vmor %vm928_vm14, %vm929_vm13  ;;  %vm939_vm0 = vweird.f32 %v1414_v32 }
 0x18e   : > { %1126 = vst [vmem:[%s1762_s13 + $0xb0] sm:$0xff] %v1094_v28  ;;  %v1069_v6 = vmul.f32 0.2, %v1037_v19  ;;  %v934_v45 = vmul.f32 %v1414_v32, %v933_v9  ;;  %vm938_vm1 = vweird.f32 %v2159_v24 }
 0x18f   : > { %v1087_v54 = vmax.f32 %v1023_v5, %v1055_v17  ;;  %v1015_v63 = vadd.f32 %v1724_v29, %v982_v39  ;;  %v926_v2 = vsub.f32 1.5, %v925_v59  ;;  %vm940_vm2 = vmor %vm938_vm1, %vm939_vm0 }
 0x190   : > { %v1101_v13 = vmax.f32 %v1037_v19, %v1069_v6  ;;  %v935_v41 = vmul.f32 0.5, %v934_v45 }
 0x191   : > { %1119 = vst [vmem:[%s1762_s13 + $0x78] sm:$0xff] %v1087_v54  ;;  %v1047_v12 = vmul.f32 0.2, %v1015_v63  ;;  %v927_v38 = vmul.f32 %v1412_v11, %v926_v2 }
 0x192   : > { %1133 = vst [vmem:[%s1762_s13 + $0xe8] sm:$0xff] %v1101_v13  ;;  %v936_v25 = vsub.f32 1.5, %v935_v41 }
 0x193   : > { %v1079_v1 = vmax.f32 %v1015_v63, %v1047_v12  ;;  %v931_v31 = vsel %vm930_vm15, %v1412_v11, %v927_v38 }
 0x194   : > { %v972_v18 = vmul.f32 %v931_v31, %v1681_v0  ;;  %v937_v40 = vmul.f32 %v1414_v32, %v936_v25 }
 0x195   : > { %1111 = vst [vmem:[%s1762_s13 + $0x38] sm:$0xff] %v1079_v1 }
 0x196   : > { %v1005_v44 = vmul.f32 %v1716_v10, %v972_v18  ;;  %v941_v33 = vsel %vm940_vm2, %v1414_v32, %v937_v40 }
 0x197   : > { %v973_v49 = vmul.f32 %v941_v33, %v1690_v8 }
 0x198   : > { %v1038_v61 = vadd.f32 %v1724_v29, %v1005_v44 }
 0x199   : > { %v1006_v43 = vmul.f32 %v1716_v10, %v973_v49 }
 0x19a   : > { %v1070_v58 = vmul.f32 0.2, %v1038_v61 }
 0x19b   : > { %v1039_v36 = vadd.f32 %v1724_v29, %v1006_v43 }
 0x19c   : > { %v1102_v3 = vmax.f32 %v1038_v61, %v1070_v58 }
 0x19d   : > { %v1071_v37 = vmul.f32 0.2, %v1039_v36 }
 0x19e   : > { %1134 = vst [vmem:[%s1762_s13 + $0xf0] sm:$0xff] %v1102_v3 }
 0x19f   : > { %v1103_v0 = vmax.f32 %v1039_v36, %v1071_v37 }
 0x1a1   : > { %1135 = vst [vmem:[%s1762_s13 + $0xf8] sm:$0xff] %v1103_v0 }
 0x1a2 PF: > { %s15_s15 = sadd.s32 1, %s1440_s15  }
 0x1a3   : > { %p12_p7 = scmp.ge.s32.totalorder %s15_s15, 4  }
 0x1a5   :  { %14 = sbr.rel (!%p12_p7) target bundleno = 1 (0x1), region = 71 }
 0x1aa   :  { %1158 = vsyncpa [#allocation3], 1 }
 0x1ab   :  { %1160 = vsyncpa [#allocation3 + $0x1], 1 }

</bundles_post_ra>
